<compile_context>
chip_gen: v5e
topology: v5e:2x2
jax: 0.10.0
libtpu: 0.0.40
codegen_flags: <defaults>
</compile_context>

<pallas_src>
import jax
import jax.numpy as jnp
from jax.experimental import pallas as pl
from jax.experimental.pallas import tpu as pltpu


def _identity_kernel(x_ref, o_ref):
    # Pure pass-through: copy the VMEM tile of x into the output tile.
    o_ref[...] = x_ref[...]


_LANE_CANDIDATES = (4096, 2048, 1024, 512, 256, 128)   # lane-dense widths
_MAX_TILE_BYTES = 4 * 1024 * 1024                       # ~4 MiB per tile
_VMEM_LIMIT_BYTES = 32 * 1024 * 1024                    # explicit scoped VMEM
_SPLIT_THRESHOLD_BYTES = 1 << 20                        # split slabs >= 1 MiB


def _pallas_copy_2d(x2d: jax.Array) -> jax.Array:
    """Tiled VMEM copy of a lane-dense (rows, lanes) slab."""
    rows, lanes = x2d.shape
    itemsize = jnp.dtype(x2d.dtype).itemsize

    # Target ~4 MiB tiles; keep the row-tile a multiple of 8 (sublane) unless
    # it spans the whole rows dim (full-extent blocks are always legal).
    tile_rows = max(8, _MAX_TILE_BYTES // (lanes * itemsize))
    if tile_rows >= rows:
        tm = rows
        # v7x has 2 TensorCores/chip: prefer >= 2 grid steps when the slab is
        # big enough to be worth splitting (harmless on v5e/v6e).
        if rows >= 16 and rows * lanes * itemsize >= _SPLIT_THRESHOLD_BYTES:
            tm = min(rows, (((rows + 1) // 2) + 7) // 8 * 8)
    else:
        tm = (tile_rows // 8) * 8

    grid = pl.cdiv(rows, tm)

    return pl.pallas_call(
        _identity_kernel,
        out_shape=jax.ShapeDtypeStruct((rows, lanes), x2d.dtype),
        grid_spec=pltpu.PrefetchScalarGridSpec(
            num_scalar_prefetch=0,
            grid=(grid,),
            in_specs=[pl.BlockSpec((tm, lanes), lambda i: (i, 0))],
            out_specs=pl.BlockSpec((tm, lanes), lambda i: (i, 0)),
        ),
        compiler_params=pltpu.CompilerParams(
            dimension_semantics=("parallel",),
            vmem_limit_bytes=_VMEM_LIMIT_BYTES,
        ),
    )(x2d)


def identity(x: jax.Array) -> jax.Array:
    """Identity forward pass (y = x) via a Pallas TPU copy kernel."""
    orig_shape = x.shape
    n = x.size
    if n == 0:
        return x

    # Fast path (common for NN tensors): pick the widest lane-dense width that
    # divides n -> free reshape in, free reshape out, zero extra HBM passes.
    lanes = None
    for cand in _LANE_CANDIDATES:
        if n % cand == 0:
            lanes = cand
            break

    if lanes is not None:
        rows = n // lanes
        out2d = _pallas_copy_2d(x.reshape(rows, lanes))
        return out2d.reshape(orig_shape)

    # Slow path (ragged sizes only): pad once to an (8, 128)-aligned slab,
    # copy, then slice the valid prefix back out.
    lanes = 128
    rows = pl.cdiv(n, lanes)
    pad_rows = pl.cdiv(rows, 8) * 8
    flat = jnp.pad(x.reshape(-1), (0, pad_rows * lanes - n))
    out2d = _pallas_copy_2d(flat.reshape(pad_rows, lanes))
    return out2d.reshape(-1)[:n].reshape(orig_shape)


if __name__ == "__main__":
    key = jax.random.PRNGKey(0)
    # NCHW input, small shape: batch=2, channels=4, H=W=16
    x = jax.random.normal(key, (2, 4, 16, 16), dtype=jnp.float32)

    y = identity(x)
    y = jax.block_until_ready(y)

    assert y.shape == x.shape and y.dtype == x.dtype
    assert bool(jnp.all(y == x))
    print("KERNEL_OK")
</pallas_src>

<mosaic_0001>
module attributes {stable_mosaic.version = 11 : i64} {
  func.func @_identity_kernel(%arg0: i32, %arg1: memref<1x2048xf32, #tpu.memory_space<vmem>>, %arg2: memref<1x2048xf32, #tpu.memory_space<vmem>>) attributes {dimension_semantics = [#tpu.dimension_semantics<parallel>], iteration_bounds = array<i64: 1>, scalar_prefetch = 0 : i64, scratch_operands = 0 : i64, tpu.core_type = #tpu.core_type<tc>, window_params = [{transform_indices = @transform_0, window_bounds = array<i64: 1, 2048>}, {transform_indices = @transform_1, window_bounds = array<i64: 1, 2048>}]} {
    %c0 = arith.constant 0 : index
    %c0_0 = arith.constant 0 : index
    %0 = vector.load %arg1[%c0, %c0_0] : memref<1x2048xf32, #tpu.memory_space<vmem>>, vector<1x2048xf32>
    %c0_1 = arith.constant 0 : index
    %c0_2 = arith.constant 0 : index
    %1 = vector.load %arg2[%c0_1, %c0_2] : memref<1x2048xf32, #tpu.memory_space<vmem>>, vector<1x2048xf32>
    tpu.vector_store %arg2[%c0_1, %c0_2], %0 {strides = array<i32>} : memref<1x2048xf32, #tpu.memory_space<vmem>>, vector<1x2048xf32>,
    return
  }
  func.func @transform_0(%arg0: i32) -> (i32, i32) {
    %c0_i32 = arith.constant 0 : i32
    %c0_i32_0 = arith.constant 0 : i32
    return %arg0, %c0_i32 : i32, i32
  }
  func.func @transform_1(%arg0: i32) -> (i32, i32) {
    %c0_i32 = arith.constant 0 : i32
    %c0_i32_0 = arith.constant 0 : i32
    return %arg0, %c0_i32 : i32, i32
  }
}

</mosaic_0001>

<bundles_post_ra>
// kernel: tpu_custom_call.1
= control target key start
LH: loop header
LB: loop body
LE: loop exit
PB: predicated region body
PF: predicated region fallthrough
CT: control target
= control target key end

     0   :  { %6 = vsyncpa [#allocation3], 0  ;;  %s116_s0 = inlined_call_operand.hbm [shape: f32[1,2048], index: 0, kind: input, shape index: {}]   ;;  %s117_s1 = inlined_call_operand.hbm [shape: f32[1,2048], index: 1, kind: output, shape index: {}]  }
   0x1   :  { %7 = vsyncpa [#allocation4], 0  ;;  %s13_s8 = sshll.u32 %s116_s0, 4  ;;  %s98_s9 = smov [#allocation2]   ;;  %s14_s8 = int_to_ptr.hbm [resolvable:$true] %s13_s8 }
   0x2   :  { %s15_s10 = sshll.u32 %s98_s9, 4  ;;  %s16_s10 = int_to_ptr.vmem [resolvable:$true] %s15_s10 }
   0x3   :  { %18 = dma.hbm_to_vmem [thread:$0]  %s14_s8, 256, %s16_s10, [#allocation3]  }
   0x4   :  { %94 = dma.done.wait [#allocation3], 256  }
   0x5   :  { %95 = vsyncadd [#allocation3], 4294967040  ;;  %s99_s11 = smov [#allocation5]   ;;  %s34_s15 = sshll.u32 %s117_s1, 4  ;;  %v23_v0 = vld [vmem:[#allocation2] sm:$0xff]  ;;  %v24_v1 = vld [vmem:[#allocation2 + $0x8] sm:$0xff]  ;;  %s35_s15 = int_to_ptr.hbm [resolvable:$true] %s34_s15 }
   0x6   :  { %s32_s12 = sshll.u32 %s99_s11, 4  ;;  %25 = vst [vmem:[#allocation5] sm:$0xff] %v23_v0  ;;  %s33_s12 = int_to_ptr.vmem [resolvable:$true] %s32_s12 }
   0x7   :  { %26 = vst [vmem:[#allocation5 + $0x8] sm:$0xff] %v24_v1 }
   0x8   :  { %37 = dma.vmem_to_hbm [thread:$0]  %s33_s12, 256, %s35_s15, [#allocation4]  }
   0x9   :  { %96 = dma.done.wait [#allocation4], 256  }
   0xa   :  { %97 = vsyncadd [#allocation4], 4294967040 }
   0xb   :  { %42 = vsyncpa [#allocation3], 1 }
   0xc   :  { %43 = vsyncpa [#allocation4], 1 }

</bundles_post_ra>
